<compile_context>
chip_gen: v7x
topology: tpu7x:2x2x1
jax: 0.10.0
libtpu: 0.0.40
codegen_flags: <defaults>
</compile_context>

<pallas_src>
import jax
import jax.numpy as jnp
from jax.experimental import pallas as pl
from jax.experimental.pallas import tpu as pltpu


def _round_up(x, m):
    return ((x + m - 1) // m) * m


# ----------------------------------------------------------------------------- kernels
def gru_step_kernel(x_ref, h_ref, wih_ref, whh_ref, b_i3_ref, b_hn_ref,
                    hnew_ref, hb_ref):
    """Single-step GRU update with fused (r|z|n) gate matmuls."""
    H = hnew_ref.shape[-1]                           # padded hidden size (static)
    f32 = jnp.float32

    x = x_ref[...]                                   # bf16 [B, E_pad]
    h = h_ref[...]                                   # f32  [B, H_pad]
    hb = h.astype(jnp.bfloat16)

    # Two fused MXU matmuls over all three gates (r|z|n packed along N).
    gi = jnp.dot(x, wih_ref[...], preferred_element_type=f32) + b_i3_ref[...]
    gh = jnp.dot(hb, whh_ref[...], preferred_element_type=f32)

    r = jax.nn.sigmoid(gi[:, 0:H] + gh[:, 0:H])
    z = jax.nn.sigmoid(gi[:, H:2 * H] + gh[:, H:2 * H])
    n = jnp.tanh(gi[:, 2 * H:3 * H] + r * (gh[:, 2 * H:3 * H] + b_hn_ref[...]))
    h_new = (1.0 - z) * n + z * h                    # f32 recurrent path

    hnew_ref[...] = h_new
    hb_ref[...] = h_new.astype(jnp.bfloat16)         # bf16 operand for fc_out


def fc_out_kernel(hb_ref, wfc_ref, bfc_ref, pred_ref):
    """One vocab tile of the output projection: [B, H_pad] @ [H_pad, TN]."""
    acc = jnp.dot(hb_ref[...], wfc_ref[...], preferred_element_type=jnp.float32)
    pred_ref[...] = (acc + bfc_ref[...]).astype(pred_ref.dtype)


# ----------------------------------------------------------------------------- params
def make_raw_decoder_params(output_dim, emb_dim, hid_dim, key):
    """PyTorch-layout f32 parameters (used by the pure-JAX reference)."""
    ks = jax.random.split(key, 6)
    scale = 0.1
    emb = scale * jax.random.normal(ks[0], (output_dim, emb_dim), jnp.float32)
    emb = emb.at[0].set(0.0)                               # padding_idx=0 -> zero row
    w_ih = scale * jax.random.normal(ks[1], (3 * hid_dim, emb_dim), jnp.float32)
    w_hh = scale * jax.random.normal(ks[2], (3 * hid_dim, hid_dim), jnp.float32)
    b_ih = scale * jax.random.normal(ks[3], (3 * hid_dim,), jnp.float32)
    b_hh = scale * jax.random.normal(ks[4], (3 * hid_dim,), jnp.float32)
    w_fc = scale * jax.random.normal(ks[5], (output_dim, hid_dim), jnp.float32)
    b_fc = jnp.zeros((output_dim,), jnp.float32)
    return dict(embedding=emb, w_ih=w_ih, w_hh=w_hh, b_ih=b_ih, b_hh=b_hh,
                w_fc=w_fc, b_fc=b_fc)


def pack_decoder_params(raw, *, tn=None):
    """One-time pack: pad to lane multiples, fuse gates, pre-add biases, cast bf16."""
    V, E = raw["embedding"].shape
    H = raw["w_hh"].shape[1]
    LANE = 128
    E_pad = _round_up(E, LANE)
    H_pad = _round_up(H, LANE)

    if tn is None:
        # Size the vocab tile so each wfc tile DMA is ~2 MiB of bf16
        # (amortizes ~0.35us per-grid-step overhead against 0.8-3.2 TB/s HBM),
        # capped at 8192 lanes and at the lane-padded vocab size.
        target = (2 << 20) // (2 * H_pad)
        tn = max(LANE, min(8192, _round_up(target, LANE)))
        tn = min(tn, _round_up(V, LANE))
    V_pad = _round_up(V, tn)

    def pad2(a, rows, cols):
        return jnp.pad(a, ((0, rows - a.shape[0]), (0, cols - a.shape[1])))

    def pack_gates(w, in_pad):
        # PyTorch [3H, in] row-blocks (r,z,n) -> [in_pad, 3*H_pad] column-blocks.
        blocks = [pad2(w[g * H:(g + 1) * H, :].T, in_pad, H_pad) for g in range(3)]
        return jnp.concatenate(blocks, axis=1)

    wih = pack_gates(raw["w_ih"], E_pad).astype(jnp.bfloat16)    # [E_pad, 3H_pad]
    whh = pack_gates(raw["w_hh"], H_pad).astype(jnp.bfloat16)    # [H_pad, 3H_pad]

    def pad1(b):
        return jnp.pad(b, (0, H_pad - H))

    b_ih, b_hh = raw["b_ih"], raw["b_hh"]
    b_i3 = jnp.concatenate([pad1(b_ih[0:H] + b_hh[0:H]),          # r (pre-summed)
                            pad1(b_ih[H:2 * H] + b_hh[H:2 * H]),  # z (pre-summed)
                            pad1(b_ih[2 * H:3 * H])]              # n (input bias only)
                           ).reshape(1, 3 * H_pad).astype(jnp.float32)
    b_hn = pad1(b_hh[2 * H:3 * H]).reshape(1, H_pad).astype(jnp.float32)

    wfc = pad2(raw["w_fc"].T, H_pad, V_pad).astype(jnp.bfloat16)  # [H_pad, V_pad]
    bfc = jnp.pad(raw["b_fc"], (0, V_pad - V)).reshape(1, V_pad).astype(jnp.float32)

    emb = jnp.pad(raw["embedding"], ((0, 0), (0, E_pad - E))).astype(jnp.bfloat16)

    return dict(embedding=emb, wih=wih, whh=whh, b_i3=b_i3, b_hn=b_hn,
                wfc=wfc, bfc=bfc,
                dims=dict(E=E, H=H, V=V, E_pad=E_pad, H_pad=H_pad,
                          V_pad=V_pad, TN=tn))


# ----------------------------------------------------------------------------- wrapper
def decoder_forward(kparams, input_ids, hidden, *, pred_dtype=jnp.float32):
    """input_ids: int32 [B]; hidden: float32 [1, B, H].
    Returns (prediction [B, V], hidden [1, B, H]).
    pred_dtype=jnp.bfloat16 halves the pred writeback traffic if downstream
    (argmax / log-softmax) tolerates bf16 logits."""
    d = kparams["dims"]
    H, V = d["H"], d["V"]
    E_pad, H_pad, V_pad, TN = d["E_pad"], d["H_pad"], d["V_pad"], d["TN"]

    B = input_ids.shape[0]
    B_pad = _round_up(B, 8)

    # Embedding gather (XLA glue); padding_idx handled by the zeroed row 0.
    # TODO(synk): move into the kernel via scalar-prefetched ids once the
    # autoregressive T-step loop is folded in.
    x = jnp.take(kparams["embedding"], input_ids, axis=0)          # bf16 [B, E_pad]
    x = jnp.pad(x, ((0, B_pad - B), (0, 0)))
    h0 = jnp.pad(hidden[0].astype(jnp.float32),
                 ((0, B_pad - B), (0, H_pad - H)))                 # f32 [B_pad, H_pad]

    # ---------------- kernel 1: GRU step (tiny, single grid point) ----------------
    gru_bytes = (B_pad * E_pad * 2 + B_pad * H_pad * 4
                 + E_pad * 3 * H_pad * 2 + H_pad * 3 * H_pad * 2
                 + 3 * H_pad * 4 + H_pad * 4
                 + B_pad * H_pad * 4 + B_pad * H_pad * 2)
    gru_vmem = int(min(48 << 20, max(8 << 20, 2 * gru_bytes + (2 << 20))))
    gru_cost = pl.CostEstimate(
        flops=2 * B_pad * (E_pad + H_pad) * 3 * H_pad + 12 * B_pad * H_pad,
        transcendentals=3 * B_pad * H_pad,
        bytes_accessed=gru_bytes)

    h_new_pad, hb = pl.pallas_call(
        gru_step_kernel,
        out_shape=(jax.ShapeDtypeStruct((B_pad, H_pad), jnp.float32),
                   jax.ShapeDtypeStruct((B_pad, H_pad), jnp.bfloat16)),
        grid=(1,),
        in_specs=[
            pl.BlockSpec((B_pad, E_pad), lambda i: (0, 0)),        # x
            pl.BlockSpec((B_pad, H_pad), lambda i: (0, 0)),        # h
            pl.BlockSpec((E_pad, 3 * H_pad), lambda i: (0, 0)),    # wih
            pl.BlockSpec((H_pad, 3 * H_pad), lambda i: (0, 0)),    # whh
            pl.BlockSpec((1, 3 * H_pad), lambda i: (0, 0)),        # b_i3
            pl.BlockSpec((1, H_pad), lambda i: (0, 0)),            # b_hn
        ],
        out_specs=(pl.BlockSpec((B_pad, H_pad), lambda i: (0, 0)),
                   pl.BlockSpec((B_pad, H_pad), lambda i: (0, 0))),
        compiler_params=pltpu.CompilerParams(
            dimension_semantics=("arbitrary",),
            vmem_limit_bytes=gru_vmem),
        cost_estimate=gru_cost,
    )(x, h0, kparams["wih"], kparams["whh"], kparams["b_i3"], kparams["b_hn"])

    # -------- kernel 2: vocab projection, large tiles, parallel over cores --------
    pred_itemsize = jnp.dtype(pred_dtype).itemsize
    fc_blk_bytes = (B_pad * H_pad * 2                          # hb (resident, tiny)
                    + H_pad * TN * 2 + TN * 4                  # wfc / bfc tiles
                    + B_pad * TN * pred_itemsize)              # pred tile
    fc_vmem = int(min(48 << 20, max(16 << 20, 2 * fc_blk_bytes + (2 << 20))))
    fc_cost = pl.CostEstimate(
        flops=2 * B_pad * H_pad * V_pad,
        transcendentals=0,
        bytes_accessed=(H_pad * V_pad * 2 + V_pad * 4
                        + B_pad * V_pad * pred_itemsize + B_pad * H_pad * 2))

    grid = (V_pad // TN,)
    pred_pad = pl.pallas_call(
        fc_out_kernel,
        out_shape=jax.ShapeDtypeStruct((B_pad, V_pad), pred_dtype),
        grid=grid,
        in_specs=[
            pl.BlockSpec((B_pad, H_pad), lambda j: (0, 0)),        # hb (resident)
            pl.BlockSpec((H_pad, TN), lambda j: (0, j)),           # wfc tile (pipelined)
            pl.BlockSpec((1, TN), lambda j: (0, j)),               # bfc tile (pipelined)
        ],
        out_specs=pl.BlockSpec((B_pad, TN), lambda j: (0, j)),     # pred tile
        compiler_params=pltpu.CompilerParams(
            dimension_semantics=("parallel",),   # vocab tiles are independent ->
            vmem_limit_bytes=fc_vmem),           # shard across both v7x TCs
        cost_estimate=fc_cost,
    )(hb, kparams["wfc"], kparams["bfc"])

    pred = pred_pad[:B, :V].astype(jnp.float32)
    h_new = h_new_pad[:B, :H]
    return pred, h_new[None]                      # hidden back to [1, B, H]


# ----------------------------------------------------------------------------- reference
def decoder_forward_ref(raw, input_ids, hidden):
    """Pure-JAX f32 reference matching PyTorch nn.GRU / nn.Linear semantics."""
    H = raw["w_hh"].shape[1]
    x = jnp.take(raw["embedding"], input_ids, axis=0)
    h = hidden[0]
    gi = x @ raw["w_ih"].T + raw["b_ih"]
    gh = h @ raw["w_hh"].T + raw["b_hh"]
    r = jax.nn.sigmoid(gi[:, 0:H] + gh[:, 0:H])
    z = jax.nn.sigmoid(gi[:, H:2 * H] + gh[:, H:2 * H])
    n = jnp.tanh(gi[:, 2 * H:] + r * gh[:, 2 * H:])
    h_new = (1.0 - z) * n + z * h
    pred = h_new @ raw["w_fc"].T + raw["b_fc"]
    return pred, h_new[None]


if __name__ == "__main__":
    output_dim, emb_dim, hid_dim = 16, 32, 32
    B = 2

    key = jax.random.PRNGKey(0)
    kp, ki, kh = jax.random.split(key, 3)
    raw = make_raw_decoder_params(output_dim, emb_dim, hid_dim, kp)
    kparams = pack_decoder_params(raw)

    input_ids = jax.random.randint(ki, (B,), 0, output_dim, dtype=jnp.int32)
    hidden = 0.1 * jax.random.normal(kh, (1, B, hid_dim), jnp.float32)

    pred, h_new = decoder_forward(kparams, input_ids, hidden)
    jax.block_until_ready((pred, h_new))

    pred_ref, h_ref = decoder_forward_ref(raw, input_ids, hidden)
    assert pred.shape == (B, output_dim) and h_new.shape == (1, B, hid_dim)
    # bf16 weights / operands -> relaxed tolerance vs the f32 reference.
    assert jnp.allclose(pred, pred_ref, atol=2e-2, rtol=2e-2), \
        f"pred mismatch: {jnp.max(jnp.abs(pred - pred_ref))}"
    assert jnp.allclose(h_new, h_ref, atol=2e-2, rtol=2e-2), \
        f"hidden mismatch: {jnp.max(jnp.abs(h_new - h_ref))}"

    print("KERNEL_OK")
</pallas_src>

<mosaic_0001>
module attributes {stable_mosaic.version = 11 : i64} {
  func.func @gru_step_kernel(%arg0: i32, %arg1: memref<8x128xbf16, #tpu.memory_space<vmem>>, %arg2: memref<8x128xf32, #tpu.memory_space<vmem>>, %arg3: memref<128x384xbf16, #tpu.memory_space<vmem>>, %arg4: memref<128x384xbf16, #tpu.memory_space<vmem>>, %arg5: memref<1x384xf32, #tpu.memory_space<vmem>>, %arg6: memref<1x128xf32, #tpu.memory_space<vmem>>, %arg7: memref<8x128xf32, #tpu.memory_space<vmem>>, %arg8: memref<8x128xbf16, #tpu.memory_space<vmem>>) attributes {dimension_semantics = [#tpu.dimension_semantics<arbitrary>], iteration_bounds = array<i64: 1>, scalar_prefetch = 0 : i64, scratch_operands = 0 : i64, tpu.core_type = #tpu.core_type<tc>, window_params = [{pipeline_mode = #tpu.pipeline_mode<synchronous>, transform_indices = @transform_0, window_bounds = array<i64: 8, 128>}, {pipeline_mode = #tpu.pipeline_mode<synchronous>, transform_indices = @transform_1, window_bounds = array<i64: 8, 128>}, {pipeline_mode = #tpu.pipeline_mode<synchronous>, transform_indices = @transform_2, window_bounds = array<i64: 128, 384>}, {pipeline_mode = #tpu.pipeline_mode<synchronous>, transform_indices = @transform_3, window_bounds = array<i64: 128, 384>}, {pipeline_mode = #tpu.pipeline_mode<synchronous>, transform_indices = @transform_4, window_bounds = array<i64: 1, 384>}, {pipeline_mode = #tpu.pipeline_mode<synchronous>, transform_indices = @transform_5, window_bounds = array<i64: 1, 128>}, {pipeline_mode = #tpu.pipeline_mode<synchronous>, transform_indices = @transform_6, window_bounds = array<i64: 8, 128>}, {pipeline_mode = #tpu.pipeline_mode<synchronous>, transform_indices = @transform_7, window_bounds = array<i64: 8, 128>}]} {
    %c0 = arith.constant 0 : index
    %c0_0 = arith.constant 0 : index
    %0 = vector.load %arg1[%c0, %c0_0] : memref<8x128xbf16, #tpu.memory_space<vmem>>, vector<8x128xbf16>
    %c0_1 = arith.constant 0 : index
    %c0_2 = arith.constant 0 : index
    %1 = vector.load %arg2[%c0_1, %c0_2] : memref<8x128xf32, #tpu.memory_space<vmem>>, vector<8x128xf32>
    %2 = arith.truncf %1 : vector<8x128xf32> to vector<8x128xbf16>
    %c0_3 = arith.constant 0 : index
    %c0_4 = arith.constant 0 : index
    %3 = vector.load %arg3[%c0_3, %c0_4] : memref<128x384xbf16, #tpu.memory_space<vmem>>, vector<128x384xbf16>
    %cst = arith.constant dense<0.000000e+00> : vector<8x384xf32>
    %4 = tpu.matmul %0, %3, %cst {dimension_numbers = #tpu.dot_dimension_numbers<[1], [0], [0], [1], [0, 0, 1, 1], [], []>} : vector<8x128xbf16>, vector<128x384xbf16>, vector<8x384xf32> -> vector<8x384xf32>
    %c0_5 = arith.constant 0 : index
    %c0_6 = arith.constant 0 : index
    %5 = vector.load %arg5[%c0_5, %c0_6] : memref<1x384xf32, #tpu.memory_space<vmem>>, vector<1x384xf32>
    %6 = vector.broadcast %5 : vector<1x384xf32> to vector<8x384xf32>
    %7 = arith.addf %4, %6 : vector<8x384xf32>
    %c0_7 = arith.constant 0 : index
    %c0_8 = arith.constant 0 : index
    %8 = vector.load %arg4[%c0_7, %c0_8] : memref<128x384xbf16, #tpu.memory_space<vmem>>, vector<128x384xbf16>
    %cst_9 = arith.constant dense<0.000000e+00> : vector<8x384xf32>
    %9 = tpu.matmul %2, %8, %cst_9 {dimension_numbers = #tpu.dot_dimension_numbers<[1], [0], [0], [1], [0, 0, 1, 1], [], []>} : vector<8x128xbf16>, vector<128x384xbf16>, vector<8x384xf32> -> vector<8x384xf32>
    %10 = vector.extract_strided_slice %7 {offsets = [0, 0], sizes = [8, 128], strides = [1, 1]} : vector<8x384xf32> to vector<8x128xf32>
    %11 = vector.extract_strided_slice %9 {offsets = [0, 0], sizes = [8, 128], strides = [1, 1]} : vector<8x384xf32> to vector<8x128xf32>
    %12 = arith.addf %10, %11 : vector<8x128xf32>
    %13 = arith.negf %12 : vector<8x128xf32>
    %14 = math.exp %13 : vector<8x128xf32>
    %cst_10 = arith.constant 1.000000e+00 : f32
    %15 = vector.broadcast %cst_10 : f32 to vector<8x128xf32>
    %16 = arith.addf %15, %14 : vector<8x128xf32>
    %17 = arith.divf %15, %16 : vector<8x128xf32>
    %18 = vector.extract_strided_slice %7 {offsets = [0, 128], sizes = [8, 128], strides = [1, 1]} : vector<8x384xf32> to vector<8x128xf32>
    %19 = vector.extract_strided_slice %9 {offsets = [0, 128], sizes = [8, 128], strides = [1, 1]} : vector<8x384xf32> to vector<8x128xf32>
    %20 = arith.addf %18, %19 : vector<8x128xf32>
    %21 = arith.negf %20 : vector<8x128xf32>
    %22 = math.exp %21 : vector<8x128xf32>
    %cst_11 = arith.constant 1.000000e+00 : f32
    %23 = vector.broadcast %cst_11 : f32 to vector<8x128xf32>
    %24 = arith.addf %23, %22 : vector<8x128xf32>
    %25 = arith.divf %23, %24 : vector<8x128xf32>
    %26 = vector.extract_strided_slice %7 {offsets = [0, 256], sizes = [8, 128], strides = [1, 1]} : vector<8x384xf32> to vector<8x128xf32>
    %27 = vector.extract_strided_slice %9 {offsets = [0, 256], sizes = [8, 128], strides = [1, 1]} : vector<8x384xf32> to vector<8x128xf32>
    %c0_12 = arith.constant 0 : index
    %c0_13 = arith.constant 0 : index
    %28 = vector.load %arg6[%c0_12, %c0_13] : memref<1x128xf32, #tpu.memory_space<vmem>>, vector<1x128xf32>
    %29 = vector.broadcast %28 : vector<1x128xf32> to vector<8x128xf32>
    %30 = arith.addf %27, %29 : vector<8x128xf32>
    %31 = arith.mulf %17, %30 : vector<8x128xf32>
    %32 = arith.addf %26, %31 : vector<8x128xf32>
    %33 = math.tanh %32 : vector<8x128xf32>
    %cst_14 = arith.constant 1.000000e+00 : f32
    %34 = vector.broadcast %cst_14 : f32 to vector<8x128xf32>
    %35 = arith.subf %34, %25 : vector<8x128xf32>
    %36 = arith.mulf %35, %33 : vector<8x128xf32>
    %37 = arith.mulf %25, %1 : vector<8x128xf32>
    %38 = arith.addf %36, %37 : vector<8x128xf32>
    %c0_15 = arith.constant 0 : index
    %c0_16 = arith.constant 0 : index
    %39 = vector.load %arg7[%c0_15, %c0_16] : memref<8x128xf32, #tpu.memory_space<vmem>>, vector<8x128xf32>
    tpu.vector_store %arg7[%c0_15, %c0_16], %38 {strides = array<i32>} : memref<8x128xf32, #tpu.memory_space<vmem>>, vector<8x128xf32>,
    %40 = arith.truncf %38 : vector<8x128xf32> to vector<8x128xbf16>
    %c0_17 = arith.constant 0 : index
    %c0_18 = arith.constant 0 : index
    %41 = vector.load %arg8[%c0_17, %c0_18] : memref<8x128xbf16, #tpu.memory_space<vmem>>, vector<8x128xbf16>
    tpu.vector_store %arg8[%c0_17, %c0_18], %40 {strides = array<i32>} : memref<8x128xbf16, #tpu.memory_space<vmem>>, vector<8x128xbf16>,
    return
  }
  func.func @transform_0(%arg0: i32) -> (i32, i32) {
    %c0_i32 = arith.constant 0 : i32
    %c0_i32_0 = arith.constant 0 : i32
    %c0_i32_1 = arith.constant 0 : i32
    return %c0_i32, %c0_i32_0 : i32, i32
  }
  func.func @transform_1(%arg0: i32) -> (i32, i32) {
    %c0_i32 = arith.constant 0 : i32
    %c0_i32_0 = arith.constant 0 : i32
    %c0_i32_1 = arith.constant 0 : i32
    return %c0_i32, %c0_i32_0 : i32, i32
  }
  func.func @transform_2(%arg0: i32) -> (i32, i32) {
    %c0_i32 = arith.constant 0 : i32
    %c0_i32_0 = arith.constant 0 : i32
    %c0_i32_1 = arith.constant 0 : i32
    return %c0_i32, %c0_i32_0 : i32, i32
  }
  func.func @transform_3(%arg0: i32) -> (i32, i32) {
    %c0_i32 = arith.constant 0 : i32
    %c0_i32_0 = arith.constant 0 : i32
    %c0_i32_1 = arith.constant 0 : i32
    return %c0_i32, %c0_i32_0 : i32, i32
  }
  func.func @transform_4(%arg0: i32) -> (i32, i32) {
    %c0_i32 = arith.constant 0 : i32
    %c0_i32_0 = arith.constant 0 : i32
    %c0_i32_1 = arith.constant 0 : i32
    return %c0_i32, %c0_i32_0 : i32, i32
  }
  func.func @transform_5(%arg0: i32) -> (i32, i32) {
    %c0_i32 = arith.constant 0 : i32
    %c0_i32_0 = arith.constant 0 : i32
    %c0_i32_1 = arith.constant 0 : i32
    return %c0_i32, %c0_i32_0 : i32, i32
  }
  func.func @transform_6(%arg0: i32) -> (i32, i32) {
    %c0_i32 = arith.constant 0 : i32
    %c0_i32_0 = arith.constant 0 : i32
    %c0_i32_1 = arith.constant 0 : i32
    return %c0_i32, %c0_i32_0 : i32, i32
  }
  func.func @transform_7(%arg0: i32) -> (i32, i32) {
    %c0_i32 = arith.constant 0 : i32
    %c0_i32_0 = arith.constant 0 : i32
    %c0_i32_1 = arith.constant 0 : i32
    return %c0_i32, %c0_i32_0 : i32, i32
  }
}

</mosaic_0001>

<bundles_post_ra>
// kernel: tpu_custom_call.1
= control target key start
LH: loop header
LB: loop body
LE: loop exit
PB: predicated region body
PF: predicated region fallthrough
CT: control target
= control target key end

     0   :  { %13 = vsyncpa [#allocation3], 0  ;;  %s1137_s0 = inlined_call_operand.hbm [shape: bf16[8,128], index: 0, kind: input, shape index: {}]   ;;  %s1138_s1 = inlined_call_operand.hbm [shape: f32[8,128], index: 1, kind: input, shape index: {}]   ;;  %s1139_s2 = inlined_call_operand.hbm [shape: bf16[128,384], index: 2, kind: input, shape index: {}]   ;;  %s1140_s3 = inlined_call_operand.hbm [shape: bf16[128,384], index: 3, kind: input, shape index: {}]   ;;  %s1141_s4 = inlined_call_operand.vmem [shape: f32[1,384], index: 4, kind: input, shape index: {}]   ;;  %s1142_s5 = inlined_call_operand.vmem [shape: f32[1,128], index: 5, kind: input, shape index: {}]   ;;  %s1143_s6 = inlined_call_operand.hbm [shape: f32[8,128], index: 6, kind: output, shape index: {0}]   ;;  %s1144_s7 = inlined_call_operand.hbm [shape: bf16[8,128], index: 7, kind: output, shape index: {1}]  }
   0x1   :  { %14 = vsyncpa [#allocation6], 0 }
   0x2   :  { %15 = vsyncpa [#allocation9], 0 }
   0x3   :  { %16 = vsyncpa [#allocation4], 0 }
   0x4   :  { %17 = vsyncpa [#allocation12], 0  ;;  %s986_s24 = smov [#allocation5]   ;;  %s987_s26 = smov [#allocation2]  }
   0x5   :  { %s34_s25 = sshll.u32 %s986_s24, 4  ;;  %s24_s27 = sshll.u32 %s987_s26, 4  ;;  %s35_s25 = int_to_ptr.vmem [resolvable:$true] %s34_s25  ;;  %s25_s27 = int_to_ptr.vmem [resolvable:$true] %s24_s27 }
   0x6   :  { %s844_s30 = scalar_lea.hbm %s1138_s1, 128 }
   0x7   :  { %p845_p0 = scmp.ne.s32.totalorder %s1138_s1, %s844_s30  ;;  %p848_p1 = scmp.lt.u32.totalorder %s844_s30, %s1138_s1 }
   0x9   :  { %p850_p2 = pnand %p848_p1, %p845_p0 }
   0xb   :  { %853 = shalt.err (!%p850_p2)
}
   0xc   :  { %s854_s12 = scalar_lea.vmem %s35_s25, 128  ;;  %p859_p4 = scmp.lt.s32.totalorder %s35_s25, %s35_s25 }
   0xd   :  { %p855_p3 = scmp.ne.s32.totalorder %s35_s25, %s854_s12  ;;  %p860_p5 = scmp.lt.s32.totalorder %s854_s12, %s854_s12 }
   0xf   :  { %p861_p6 = por %p860_p5, %p859_p4 }
  0x11   :  { %p862_p7 = pnand %p861_p6, %p855_p3 }
  0x13   :  { %865 = shalt.err (!%p862_p7)
}
  0x14   :  { %37 = dma.hbm_to_vmem [thread:$0]  %s1138_s1, 128, %s35_s25, [#allocation6]  }
  0x15   :  { %s866_s17 = scalar_lea.hbm %s1137_s0, 64 }
  0x16   :  { %p867_p8 = scmp.ne.s32.totalorder %s1137_s0, %s866_s17  ;;  %p870_p9 = scmp.lt.u32.totalorder %s866_s17, %s1137_s0 }
  0x18   :  { %p872_p10 = pnand %p870_p9, %p867_p8 }
  0x1a   :  { %875 = shalt.err (!%p872_p10)
}
  0x1b   :  { %s876_s22 = scalar_lea.vmem %s25_s27, 64  ;;  %p881_p12 = scmp.lt.s32.totalorder %s25_s27, %s25_s27 }
  0x1c   :  { %p877_p11 = scmp.ne.s32.totalorder %s25_s27, %s876_s22  ;;  %p882_p13 = scmp.lt.s32.totalorder %s876_s22, %s876_s22 }
  0x1e   :  { %p883_p0 = por %p882_p13, %p881_p12 }
  0x20   :  { %p884_p1 = pnand %p883_p0, %p877_p11 }
  0x22   :  { %887 = shalt.err (!%p884_p1)
}
  0x23   :  { %27 = dma.hbm_to_vmem [thread:$0]  %s1137_s0, 64, %s25_s27, [#allocation3]  }
  0x24   :  { %s988_s24 = smov [#allocation7]   ;;  %s888_s29 = scalar_lea.hbm %s1139_s2, 3072 }
  0x25   :  { %s43_s25 = sshll.u32 %s988_s24, 4  ;;  %p889_p2 = scmp.ne.s32.totalorder %s1139_s2, %s888_s29  ;;  %s44_s25 = int_to_ptr.vmem [resolvable:$true] %s43_s25 }
  0x26   :  { %p892_p3 = scmp.lt.u32.totalorder %s888_s29, %s1139_s2 }
  0x28   :  { %p894_p4 = pnand %p892_p3, %p889_p2 }
  0x2a   :  { %897 = shalt.err (!%p894_p4)
}
  0x2b   :  { %s898_s11 = scalar_lea.vmem %s44_s25, 3072  ;;  %p903_p6 = scmp.lt.s32.totalorder %s44_s25, %s44_s25 }
  0x2c   :  { %p899_p5 = scmp.ne.s32.totalorder %s44_s25, %s898_s11  ;;  %p904_p7 = scmp.lt.s32.totalorder %s898_s11, %s898_s11 }
  0x2e   :  { %p905_p8 = por %p904_p7, %p903_p6 }
  0x30   :  { %p906_p9 = pnand %p905_p8, %p899_p5 }
  0x32   :  { %909 = shalt.err (!%p906_p9)
}
  0x33   :  { %s989_s0 = smov 192   ;;  %s990_s27 = smov 12  }
  0x34   :  { %49 = dma.hbm_to_vmem [thread:$0]  %s1139_s2, 3072, %s44_s25, [#allocation6], %s989_s0, %s989_s0, %s990_s27  }
  0x35   :  { %s991_s14 = smov [#allocation8]   ;;  %s910_s18 = scalar_lea.hbm %s1140_s3, 3072 }
  0x36   :  { %s55_s15 = sshll.u32 %s991_s14, 4  ;;  %p911_p10 = scmp.ne.s32.totalorder %s1140_s3, %s910_s18  ;;  %s56_s15 = int_to_ptr.vmem [resolvable:$true] %s55_s15 }
  0x37   :  { %p914_p11 = scmp.lt.u32.totalorder %s910_s18, %s1140_s3 }
  0x39   :  { %p916_p12 = pnand %p914_p11, %p911_p10 }
  0x3b   :  { %919 = shalt.err (!%p916_p12)
}
  0x3c   :  { %s920_s1 = scalar_lea.vmem %s56_s15, 3072  ;;  %p925_p0 = scmp.lt.s32.totalorder %s56_s15, %s56_s15 }
  0x3d   :  { %p921_p13 = scmp.ne.s32.totalorder %s56_s15, %s920_s1  ;;  %p926_p1 = scmp.lt.s32.totalorder %s920_s1, %s920_s1 }
  0x3f   :  { %p927_p2 = por %p926_p1, %p925_p0 }
  0x41   :  { %p928_p3 = pnand %p927_p2, %p921_p13 }
  0x43   :  { %931 = shalt.err (!%p928_p3)
}
  0x44   :  { %61 = dma.hbm_to_vmem [thread:$0]  %s1140_s3, 3072, %s56_s15, [#allocation9], %s989_s0, %s989_s0, %s990_s27  }
  0x45   :  { %976 = dma.done.wait [#allocation3], 64  }
  0x46   :  { %977 = vsyncadd [#allocation3], 4294967232 }
  0x47   :  { %978 = dma.done.wait [#allocation6], 3200  }
  0x48   :  { %979 = vsyncadd [#allocation6], 4294964096 }
  0x49   :  { %980 = dma.done.wait [#allocation9], 3072  }
  0x4a   :  { %981 = vsyncadd [#allocation9], 4294964224  ;;  %v992_v0 = vmov 0.0   ;;  %v993_v1 = vmov 0   ;;  %vm994_vm0 = vmmov 0   ;;  %v80_v48 = vld [vmem:[#allocation5] sm:$0xff]  ;;  %v116_v57 = vlaneseq }
  0x4b   :  { %713 = vmatprep.subr.bf16.mxu1 %v992_v0  ;;  %291 = vmatprep.mubr.bf16.mxu0 %v993_v1  ;;  %v770_v2 = vld [vmem:[#allocation7 + $0x4] ss:$12 sps:$4 sm:$0xff]   ;;  %v772_v3 = vld [vmem:[#allocation7] ss:$12 sps:$4 sm:$0xff]   ;;  %v773_v4 = vld [vmem:[#allocation7 + $0x1c] ss:$12 sps:$4 sm:$0xff]   ;;  %v81_v50 = vpack.c.bf16 %v80_v48, %v80_v48 }
  0x4c   :  { %729 = vmatprep.mubr.msk.bf16.mxu1 %vm994_vm0, %v992_v0  ;;  %259 = vmatprep.subr.bf16.mxu0 %v770_v2  ;;  %v775_v5 = vld [vmem:[#allocation7 + $0x18] ss:$12 sps:$4 sm:$0xff]   ;;  %v776_v6 = vld [vmem:[#allocation7 + $0x34] ss:$12 sps:$4 sm:$0xff]   ;;  %v778_v7 = vld [vmem:[#allocation7 + $0x30] ss:$12 sps:$4 sm:$0xff]  }
  0x4d   :  { %260 = vmatpush1.bf16.msra.mxu0 %v772_v3  ;;  %v779_v8 = vld [vmem:[#allocation7 + $0x4c] ss:$12 sps:$4 sm:$0xff]   ;;  %v790_v9 = vld [vmem:[#allocation7 + $0x8] ss:$12 sps:$4 sm:$0xff]   ;;  %v782_v11 = vld [vmem:[#allocation7 + $0x64] ss:$12 sps:$4 sm:$0xff]  }
  0x4e   :  { %261 = vmatprep.subr.bf16.mxu0 %v773_v4  ;;  %v781_v10 = vld [vmem:[#allocation7 + $0x48] ss:$12 sps:$4 sm:$0xff]   ;;  %714 = vmatpush3.bf16.msra.mxu1 %v790_v9  ;;  %v794_v12 = vld [vmem:[#allocation7 + $0x20] ss:$12 sps:$4 sm:$0xff]   ;;  %v796_v14 = vld [vmem:[#allocation7 + $0x38] ss:$12 sps:$4 sm:$0xff]  }
  0x4f   :  { %715 = vmatprep.subr.bf16.mxu1 %v992_v0  ;;  %v784_v13 = vld [vmem:[#allocation7 + $0x60] ss:$12 sps:$4 sm:$0xff]   ;;  %v785_v15 = vld [vmem:[#allocation7 + $0x7c] ss:$12 sps:$4 sm:$0xff]   ;;  %v787_v16 = vld [vmem:[#allocation7 + $0x78] ss:$12 sps:$4 sm:$0xff]  }
  0x50   :  { %v800_v17 = vld [vmem:[#allocation7 + $0x50] ss:$12 sps:$4 sm:$0xff]   ;;  %v788_v18 = vld [vmem:[#allocation7 + $0x94] ss:$12 sps:$4 sm:$0xff]   ;;  %v792_v21 = vld [vmem:[#allocation7 + $0xac] ss:$12 sps:$4 sm:$0xff]  }
  0x51   :  { %262 = vmatpush1.bf16.msra.mxu0 %v775_v5  ;;  %v791_v19 = vld [vmem:[#allocation7 + $0x90] ss:$12 sps:$4 sm:$0xff]   ;;  %v804_v20 = vld [vmem:[#allocation7 + $0x68] ss:$12 sps:$4 sm:$0xff]   ;;  %v808_v23 = vld [vmem:[#allocation7 + $0x80] ss:$12 sps:$4 sm:$0xff]  }
  0x52   :  { %263 = vmatprep.subr.bf16.mxu0 %v776_v6  ;;  %716 = vmatpush3.bf16.msra.mxu1 %v794_v12  ;;  %v795_v22 = vld [vmem:[#allocation7 + $0xa8] ss:$12 sps:$4 sm:$0xff]   ;;  %v799_v24 = vld [vmem:[#allocation8 + $0x4] ss:$12 sps:$4 sm:$0xff]   ;;  %v797_v25 = vld [vmem:[#allocation8] ss:$12 sps:$4 sm:$0xff]  }
  0x53   :  { %717 = vmatprep.subr.bf16.mxu1 %v992_v0  ;;  %v79_v26 = vld [vmem:[#allocation2] sm:$0xf]  ;;  %v812_v27 = vld [vmem:[#allocation7 + $0x98] ss:$12 sps:$4 sm:$0xff]   ;;  %v803_v28 = vld [vmem:[#allocation8 + $0x1c] ss:$12 sps:$4 sm:$0xff]  }
  0x54   :  { %v801_v29 = vld [vmem:[#allocation8 + $0x18] ss:$12 sps:$4 sm:$0xff]   ;;  %v816_v30 = vld [vmem:[#allocation7 + $0xb0] ss:$12 sps:$4 sm:$0xff]   ;;  %v807_v31 = vld [vmem:[#allocation8 + $0x34] ss:$12 sps:$4 sm:$0xff]  }
  0x55   :  { %264 = vmatpush1.bf16.msra.mxu0 %v778_v7  ;;  %v805_v32 = vld [vmem:[#allocation8 + $0x30] ss:$12 sps:$4 sm:$0xff]   ;;  %v823_v33 = vld [vmem:[#allocation8 + $0x8] ss:$12 sps:$4 sm:$0xff]   ;;  %v811_v34 = vld [vmem:[#allocation8 + $0x4c] ss:$12 sps:$4 sm:$0xff]  }
  0x56   :  { %265 = vmatprep.subr.bf16.mxu0 %v779_v8  ;;  %718 = vmatpush3.bf16.msra.mxu1 %v796_v14  ;;  %v809_v35 = vld [vmem:[#allocation8 + $0x48] ss:$12 sps:$4 sm:$0xff]   ;;  %v827_v36 = vld [vmem:[#allocation8 + $0x20] ss:$12 sps:$4 sm:$0xff]   ;;  %v815_v37 = vld [vmem:[#allocation8 + $0x64] ss:$12 sps:$4 sm:$0xff]  }
  0x57   :  { %719 = vmatprep.subr.bf16.mxu1 %v992_v0  ;;  %v813_v38 = vld [vmem:[#allocation8 + $0x60] ss:$12 sps:$4 sm:$0xff]   ;;  %v828_v39 = vld [vmem:[#allocation8 + $0x38] ss:$12 sps:$4 sm:$0xff]   ;;  %v819_v40 = vld [vmem:[#allocation8 + $0x7c] ss:$12 sps:$4 sm:$0xff]  }
  0x58   :  { %v817_v41 = vld [vmem:[#allocation8 + $0x78] ss:$12 sps:$4 sm:$0xff]   ;;  %v829_v42 = vld [vmem:[#allocation8 + $0x50] ss:$12 sps:$4 sm:$0xff]   ;;  %v822_v43 = vld [vmem:[#allocation8 + $0x94] ss:$12 sps:$4 sm:$0xff]  }
  0x59   :  { %266 = vmatpush1.bf16.msra.mxu0 %v781_v10  ;;  %v820_v44 = vld [vmem:[#allocation8 + $0x90] ss:$12 sps:$4 sm:$0xff]   ;;  %v830_v45 = vld [vmem:[#allocation8 + $0x68] ss:$12 sps:$4 sm:$0xff]   ;;  %v826_v46 = vld [vmem:[#allocation8 + $0xac] ss:$12 sps:$4 sm:$0xff]  }
  0x5a   :  { %267 = vmatprep.subr.bf16.mxu0 %v782_v11  ;;  %720 = vmatpush3.bf16.msra.mxu1 %v800_v17  ;;  %v824_v47 = vld [vmem:[#allocation8 + $0xa8] ss:$12 sps:$4 sm:$0xff]   ;;  %v831_v49 = vld [vmem:[#allocation8 + $0x80] ss:$12 sps:$4 sm:$0xff]   ;;  %v832_v51 = vld [vmem:[#allocation8 + $0x98] ss:$12 sps:$4 sm:$0xff]  }
  0x5b   :  { %721 = vmatprep.subr.bf16.mxu1 %v992_v0  ;;  %v833_v52 = vld [vmem:[#allocation8 + $0xb0] ss:$12 sps:$4 sm:$0xff]   ;;  %v117_v58 = vshrl.u32 %v116_v57, 7  ;;  %v114_v60 = vld [vmem:[%s1141_s4] sm:$0x7]  ;;  %s995_s26 = smov [#allocation10]  }
  0x5c   :  { %s619_s28 = sshll.u32 %s995_s26, 4  ;;  %s996_s29 = smov [#allocation11]   ;;  %s620_s28 = int_to_ptr.vmem [resolvable:$true] %s619_s28 }
  0x5d   :  { %268 = vmatpush1.bf16.msra.mxu0 %v784_v13  ;;  %v118_v59 = vsub.s32 0, %v117_v58  ;;  %v122_v61 = vsub.s32 1, %v117_v58  ;;  %v126_v14 = vsub.s32 2, %v117_v58  ;;  %s629_s30 = sshll.u32 %s996_s29, 4  ;;  %p937_p5 = scmp.lt.s32.totalorder %s620_s28, %s620_s28  ;;  %s630_s30 = int_to_ptr.vmem [resolvable:$true] %s629_s30 }
  0x5e   :  { %269 = vmatprep.subr.bf16.mxu0 %v785_v15  ;;  %722 = vmatpush3.bf16.msra.mxu1 %v804_v20 }
  0x5f   :  { %723 = vmatprep.subr.bf16.mxu1 %v992_v0  ;;  %v119_v62 = vrot.slane %v114_v60, %v118_v59  ;;  %v127_v17 = vrot.slane %v114_v60, %v126_v14 }
  0x61   :  { %270 = vmatpush1.bf16.msra.mxu0 %v787_v16  ;;  %v694_v16 = vld [vmem:[%s1142_s5] ss:$0 sm:$0xff]  ;;  %s932_s5 = scalar_lea.vmem %s620_s28, 128 }
  0x62   :  { %271 = vmatprep.subr.bf16.mxu0 %v788_v18  ;;  %724 = vmatpush3.bf16.msra.mxu1 %v808_v23  ;;  %p933_p4 = scmp.ne.s32.totalorder %s620_s28, %s932_s5  ;;  %p938_p6 = scmp.lt.s32.totalorder %s932_s5, %s932_s5 }
  0x63   :  { %725 = vmatprep.subr.bf16.mxu1 %v992_v0 }
  0x64   :  { %p939_p7 = por %p938_p6, %p937_p5 }
  0x65   :  { %272 = vmatpush1.bf16.msra.mxu0 %v791_v19 }
  0x66   :  { %273 = vmatprep.subr.bf16.mxu0 %v792_v21  ;;  %726 = vmatpush3.bf16.msra.mxu1 %v812_v27  ;;  %p940_p8 = pnand %p939_p7, %p933_p4 }
  0x67   :  { %727 = vmatprep.subr.bf16.mxu1 %v992_v0 }
  0x69   :  { %274 = vmatpush1.bf16.msra.mxu0 %v795_v22 }
  0x6a   :  { %500 = vmatprep.subr.bf16.mxu0 %v799_v24  ;;  %728 = vmatpush3.bf16.msra.mxu1 %v816_v30 }
  0x6b   :  { %733 = vmatprep.subr.bf16.mxu1 %v992_v0 }
  0x6c   :  { %292 = vmatmul.mubr.bf16.vlgmr.msra.gmra.mrb[0].mxu0 %v79_v26 }
  0x6d   :  { %501 = vmatpush1.bf16.msra.mxu0 %v797_v25  ;;  %532 = vmatprep.mubr.bf16.mxu0 %v993_v1  ;;  %v123_v1 = vrot.slane %v114_v60, %v122_v61 }
  0x6e   :  { %502 = vmatprep.subr.bf16.mxu0 %v803_v28  ;;  %730 = vmatmul.mubr.bf16.vlgmr.msra.gmra.mrb[0].mxu1 %v79_v26 }
  0x6f   :  { %734 = vmatpush3.bf16.msra.mxu1 %v823_v33  ;;  %749 = vmatprep.mubr.msk.bf16.mxu1 %vm994_vm0, %v992_v0 }
  0x70   :  { %735 = vmatprep.subr.bf16.mxu1 %v992_v0 }
  0x71   :  { %503 = vmatpush1.bf16.msra.mxu0 %v801_v29 }
  0x72   :  { %504 = vmatprep.subr.bf16.mxu0 %v807_v31 }
  0x73   :  { %736 = vmatpush3.bf16.msra.mxu1 %v827_v36 }
  0x74   :  { %737 = vmatprep.subr.bf16.mxu1 %v992_v0 }
  0x75   :  { %505 = vmatpush1.bf16.msra.mxu0 %v805_v32 }
  0x76   :  { %506 = vmatprep.subr.bf16.mxu0 %v811_v34 }
  0x77   :  { %738 = vmatpush3.bf16.msra.mxu1 %v828_v39 }
  0x78   :  { %739 = vmatprep.subr.bf16.mxu1 %v992_v0 }
  0x79   :  { %507 = vmatpush1.bf16.msra.mxu0 %v809_v35 }
  0x7a   :  { %508 = vmatprep.subr.bf16.mxu0 %v815_v37 }
  0x7b   :  { %740 = vmatpush3.bf16.msra.mxu1 %v829_v42 }
  0x7c   :  { %741 = vmatprep.subr.bf16.mxu1 %v992_v0 }
  0x7d   :  { %509 = vmatpush1.bf16.msra.mxu0 %v813_v38 }
  0x7e   :  { %510 = vmatprep.subr.bf16.mxu0 %v819_v40 }
  0x7f   :  { %742 = vmatpush3.bf16.msra.mxu1 %v830_v45 }
  0x80   :  { %743 = vmatprep.subr.bf16.mxu1 %v992_v0 }
  0x81   :  { %511 = vmatpush1.bf16.msra.mxu0 %v817_v41 }
  0x82   :  { %512 = vmatprep.subr.bf16.mxu0 %v822_v43 }
  0x83   :  { %744 = vmatpush3.bf16.msra.mxu1 %v831_v49 }
  0x84   :  { %745 = vmatprep.subr.bf16.mxu1 %v992_v0 }
  0x85   :  { %513 = vmatpush1.bf16.msra.mxu0 %v820_v44 }
  0x86   :  { %514 = vmatprep.subr.bf16.mxu0 %v826_v46 }
  0x87   :  { %746 = vmatpush3.bf16.msra.mxu1 %v832_v51 }
  0x88   :  { %747 = vmatprep.subr.bf16.mxu1 %v992_v0 }
  0x89   :  { %515 = vmatpush1.bf16.msra.mxu0 %v824_v47 }
  0x8b   :  { %748 = vmatpush3.bf16.msra.mxu1 %v833_v52 }
  0x8c   :  { %533 = vmatmul.mubr.bf16.vlgmr.msra.gmra.mrb[0].mxu0 %v81_v50 }
  0x8e   :  { %750 = vmatmul.mubr.bf16.vlgmr.msra.gmra.mrb[4].mxu1 %v81_v50 }
 0x141   :  { %v334_v53 = vpop.f32.mrb[0].mxu1 }
 0x142   :  { %v731_v54 = vpop.f32.mrb[1].mxu1  ;;  %v335_v21 = vadd.f32 %v334_v53, %v127_v17 }
 0x143   :  { %v337_v55 = vpop.f32.mrb[2].mxu1 }
 0x144   :  { %v732_v56 = vpop.f32.mrb[3].mxu1 }
 0x15f   :  { %v534_v63 = vpop.f32.mrb[0].mxu0 }
 0x160   :  { %v753_v2 = vadd.f32 %v534_v63, %v119_v62  ;;  %v536_v3 = vpop.f32.mrb[1].mxu0 }
 0x161   :  { %v538_v0 = vpop.f32.mrb[2].mxu0  ;;  %v754_v6 = vadd.f32 %v536_v3, %v123_v1  ;;  %v575_v8 = vpop.f32.mrb[4].mxu1 }
 0x162   :  { %v692_v4 = vmul.f32 -1.442695, %v753_v2  ;;  %v539_v5 = vpop.f32.mrb[3].mxu0  ;;  %v751_v9 = vpop.f32.mrb[5].mxu1  ;;  %v602_v19 = vadd.f32 %v694_v16, %v575_v8 }
 0x163   :  { %v693_v7 = vmul.f32 -1.442695, %v754_v6  ;;  %v578_v10 = vpop.f32.mrb[6].mxu1 }
 0x164   :  { %834 = vpow2.f32 %v692_v4  ;;  %v752_v11 = vpop.f32.mrb[7].mxu1 }
 0x165   :  { %836 = vpow2.f32 %v693_v7 }
 0x16e   :  { %v835_v12 = vpop.eup %834 }
 0x16f   :  { %v585_v13 = vadd.f32 1.0, %v835_v12  ;;  %v837_v15 = vpop.eup %836 }
 0x170   :  { %v592_v18 = vadd.f32 1.0, %v837_v15 }
 0x171   :  { %838 = vrcp.f32 %v585_v13 }
 0x172   :  { %840 = vrcp.f32 %v592_v18 }
 0x17b   :  { %v839_v20 = vpop.eup %838 }
 0x17c   :  { %v603_v22 = vmul.f32 %v839_v20, %v602_v19  ;;  %v841_v24 = vpop.eup %840 }
 0x17d   :  { %v606_v25 = vsub.f32 1.0, %v841_v24  ;;  %v608_v28 = vmul.f32 %v841_v24, %v80_v48 }
 0x17e   :  { %v604_v23 = vadd.f32 %v603_v22, %v335_v21 }
 0x180   :  { %842 = vtanh.f32 %v604_v23 }
 0x18a   :  { %v843_v26 = vpop.eup %842 }
 0x18b   :  { %v607_v27 = vmul.f32 %v843_v26, %v606_v25 }
 0x18d   :  { %v609_v29 = vadd.f32 %v608_v28, %v607_v27 }
 0x18f   :  { %610 = vst [vmem:[#allocation10] sm:$0xff] %v609_v29  ;;  %v611_v30 = vpack.c.bf16 %v609_v29, %v609_v29 }
 0x190   :  { %943 = shalt.err (!%p940_p8)
}
 0x191   :  { %s944_s10 = scalar_lea.hbm %s1143_s6, 128 }
 0x192   :  { %p945_p9 = scmp.ne.s32.totalorder %s1143_s6, %s944_s10  ;;  %p948_p10 = scmp.lt.u32.totalorder %s944_s10, %s1143_s6 }
 0x194   :  { %p950_p11 = pnand %p948_p10, %p945_p9 }
 0x196   :  { %953 = shalt.err (!%p950_p11)
}
 0x197   :  { %622 = dma.vmem_to_hbm [thread:$0]  %s620_s28, 128, %s1143_s6, [#allocation4]   ;;  %612 = vst [vmem:[#allocation11] sm:$0xf] %v611_v30 }
 0x198   :  { %s954_s15 = scalar_lea.vmem %s630_s30, 64  ;;  %p959_p13 = scmp.lt.s32.totalorder %s630_s30, %s630_s30 }
 0x199   :  { %p955_p12 = scmp.ne.s32.totalorder %s630_s30, %s954_s15  ;;  %p960_p0 = scmp.lt.s32.totalorder %s954_s15, %s954_s15 }
 0x19b   :  { %p961_p1 = por %p960_p0, %p959_p13 }
 0x19d   :  { %p962_p2 = pnand %p961_p1, %p955_p12 }
 0x19f   :  { %965 = shalt.err (!%p962_p2)
}
 0x1a0   :  { %s966_s18 = scalar_lea.hbm %s1144_s7, 64 }
 0x1a1   :  { %p967_p3 = scmp.ne.s32.totalorder %s1144_s7, %s966_s18  ;;  %p970_p4 = scmp.lt.u32.totalorder %s966_s18, %s1144_s7 }
 0x1a3   :  { %p972_p5 = pnand %p970_p4, %p967_p3 }
 0x1a5   :  { %975 = shalt.err (!%p972_p5)
}
 0x1a6   :  { %632 = dma.vmem_to_hbm [thread:$0]  %s630_s30, 64, %s1144_s7, [#allocation12]  }
 0x1a7   :  { %982 = dma.done.wait [#allocation4], 128  }
 0x1a8   :  { %983 = vsyncadd [#allocation4], 4294967168 }
 0x1a9   :  { %984 = dma.done.wait [#allocation12], 64  }
 0x1aa   :  { %985 = vsyncadd [#allocation12], 4294967232 }
 0x1ab   :  { %639 = vsyncpa [#allocation3], 1 }
 0x1ac   :  { %640 = vsyncpa [#allocation6], 1 }
 0x1ad   :  { %641 = vsyncpa [#allocation9], 1 }
 0x1ae   :  { %642 = vsyncpa [#allocation4], 1 }
 0x1af   :  { %643 = vsyncpa [#allocation12], 1 }

</bundles_post_ra>
